<compile_context>
chip_gen: v7x
topology: tpu7x:2x2x1
jax: 0.10.0
libtpu: 0.0.40
codegen_flags: <defaults>
</compile_context>

<pallas_src>
import jax
import jax.numpy as jnp
from jax.experimental import pallas as pl
from jax.experimental.pallas import tpu as pltpu

LANE = 128          # vreg lane width; all feature dims padded to this
EPS_BN = 1e-5       # PyTorch BatchNorm1d default eps
EPS_NORM = 1e-12    # F.normalize default eps


# ---------------------------------------------------------------------------
# Fused forward kernel (closure over static config)
# ---------------------------------------------------------------------------
def _make_fused_kernel(B, N, P, TILE_N, hidden_dim, num_layers):
    def kernel(adj_ref, x_ref, hmask_ref, w_ref, b_ref, wp_ref, bp_ref,
               out_ref, h_ref, pooled_ref):
        l = pl.program_id(0)                       # layer index (outer, slow)
        t = pl.program_id(1)                       # node-row tile index (fast)
        num_tiles = pl.num_programs(1)
        prev = l % 2                               # ping-pong read slot
        is_last_layer = l == num_layers - 1
        row_start = pl.multiple_of(t * TILE_N, TILE_N)

        # --- one-time init at the very first grid step -----------------------
        @pl.when((l == 0) & (t == 0))
        def _():
            h_ref[0] = x_ref[...]                                  # layer-0 input
            out_ref[...] = jnp.broadcast_to(bp_ref[...], (B, P))   # pred bias

        # --- per-layer init of the running node-max --------------------------
        @pl.when(t == 0)
        def _():
            pooled_ref[...] = jnp.full((B, P), -jnp.inf, dtype=jnp.float32)

        # --- graph conv for this node-row tile --------------------------------
        adj_t = adj_ref[...]                                       # (B,TILE_N,N) bf16
        h_prev = h_ref[prev]                                       # (B,N,P) bf16
        t0 = jnp.einsum('bij,bjd->bid', adj_t, h_prev,
                        preferred_element_type=jnp.float32)        # (B,TILE_N,P) f32
        w = w_ref[0]                                               # (P,P) bf16
        y = jnp.dot(t0.astype(jnp.bfloat16).reshape(B * TILE_N, P), w,
                    preferred_element_type=jnp.float32).reshape(B, TILE_N, P)
        y = y + b_ref[...]                                         # (1,1,P) broadcast
        # F.normalize(p=2, dim=2): y * rsqrt(max(||y||^2, eps^2))
        ss = jnp.sum(y * y, axis=-1, keepdims=True)
        y = y * jax.lax.rsqrt(jnp.maximum(ss, EPS_NORM * EPS_NORM))

        # --- hidden layers: ReLU -> BatchNorm1d(N) -> store h, pool max ------
        @pl.when(jnp.logical_not(is_last_layer))
        def _():
            xr = jnp.maximum(y, 0.0)
            denom = float(B * hidden_dim)
            s1 = jnp.sum(xr, axis=2, keepdims=True)                # (B,TILE_N,1)
            s2 = jnp.sum(xr * xr, axis=2, keepdims=True)
            mean = jnp.sum(s1, axis=0, keepdims=True) / denom      # (1,TILE_N,1)
            ex2 = jnp.sum(s2, axis=0, keepdims=True) / denom
            var = jnp.maximum(ex2 - mean * mean, 0.0)              # biased (training)
            # Fold the hidden-lane mask into the BN scale: padded lanes -> 0.
            scale = hmask_ref[...].reshape(1, 1, P) * jax.lax.rsqrt(var + EPS_BN)
            xn = (xr - mean) * scale                               # (B,TILE_N,P) f32
            xn_bf = xn.astype(jnp.bfloat16)
            # write into the other ping-pong slot (read slot = prev)
            @pl.when(prev == 0)
            def _():
                h_ref[1, :, pl.ds(row_start, TILE_N), :] = xn_bf
            @pl.when(prev == 1)
            def _():
                h_ref[0, :, pl.ds(row_start, TILE_N), :] = xn_bf
            pooled_ref[...] = jnp.maximum(pooled_ref[...], jnp.max(xn, axis=1))

        # --- last layer: no ReLU / BN, just node-max pooling ------------------
        @pl.when(is_last_layer)
        def _():
            pooled_ref[...] = jnp.maximum(pooled_ref[...], jnp.max(y, axis=1))

        # --- end of layer: fold this layer's pooled features into ypred ------
        @pl.when(t == num_tiles - 1)
        def _():
            out_ref[...] += jnp.dot(pooled_ref[...].astype(jnp.bfloat16),
                                    wp_ref[0], preferred_element_type=jnp.float32)

    return kernel


# ---------------------------------------------------------------------------
# Host-side padding helpers (zero-pad everything to 128 lanes)
# ---------------------------------------------------------------------------
def _pad_weight(w, P):
    din, dout = w.shape
    out = jnp.zeros((P, P), jnp.bfloat16)
    return out.at[:din, :dout].set(w.astype(jnp.bfloat16))


def _pad_bias(b, P):
    out = jnp.zeros((1, P), jnp.float32)
    return out.at[0, : b.shape[0]].set(b.astype(jnp.float32))


def _pad_pred_weight(wp, hidden_dim, embedding_dim, num_layers, P):
    # (pred_input_dim, label_dim) -> (num_layers, P, P): slice i holds the rows
    # consumed by layer i's pooled features, zero elsewhere.
    label_dim = wp.shape[1]
    stacked = jnp.zeros((num_layers, P, P), jnp.bfloat16)
    off = 0
    for i in range(num_layers):
        d = hidden_dim if i < num_layers - 1 else embedding_dim
        stacked = stacked.at[i, :d, :label_dim].set(
            wp[off:off + d, :].astype(jnp.bfloat16))
        off += d
    return stacked


def _choose_tile_n(B, N):
    """Node-row tile so 2 double-buffered bf16 adj tiles stay ~<= 8 MiB
    (safe inside v7x's 32 MiB scoped-VMEM default together with the bf16 h
    ping-pong scratch)."""
    budget = 8 * 1024 * 1024
    max_rows = budget // max(2 * B * N * 2, 1)
    if N <= max_rows or N < 16:
        return N
    cand = min((max_rows // 16) * 16, N)      # multiple of 16: bf16 sublane pack
    while cand >= 16:
        if N % cand == 0:
            return cand
        cand -= 16
    return N                                   # fallback: single tile


# ---------------------------------------------------------------------------
# Full forward pass of GcnEncoderGraph (single pallas_call)
# ---------------------------------------------------------------------------
def gcn_encoder_graph_forward(params, x, adj):
    B, N, input_dim = x.shape
    hidden_dim = params["conv_first"]["w"].shape[1]
    embedding_dim = params["conv_last"]["w"].shape[1]
    label_dim = params["pred"]["w"].shape[1]
    num_block = len(params["conv_block"])
    num_layers = num_block + 2
    P = LANE
    assert max(input_dim, hidden_dim, embedding_dim, label_dim) <= P

    TILE_N = _choose_tile_n(B, N)
    assert N % TILE_N == 0
    num_tiles = N // TILE_N

    # Stack per-layer parameters on a leading layer axis (selected by grid l).
    w_list = ([params["conv_first"]["w"]]
              + [blk["w"] for blk in params["conv_block"]]
              + [params["conv_last"]["w"]])
    b_list = ([params["conv_first"]["b"]]
              + [blk["b"] for blk in params["conv_block"]]
              + [params["conv_last"]["b"]])
    w_all = jnp.stack([_pad_weight(w, P) for w in w_list])            # (L,P,P) bf16
    b_all = jnp.stack([_pad_bias(b, P) for b in b_list])              # (L,1,P) f32
    wp_all = _pad_pred_weight(params["pred"]["w"], hidden_dim,
                              embedding_dim, num_layers, P)           # (L,P,P) bf16
    bp = _pad_bias(params["pred"]["b"], P)                            # (1,P)   f32

    adj_bf = adj.astype(jnp.bfloat16)                  # 0/1 adjacency -> exact
    x_pad = jnp.zeros((B, N, P), jnp.bfloat16).at[:, :, :input_dim].set(
        x.astype(jnp.bfloat16))
    hmask = (jnp.arange(P) < hidden_dim).astype(jnp.float32).reshape(1, P)

    kernel = _make_fused_kernel(B, N, P, TILE_N, hidden_dim, num_layers)

    in_specs = [
        pl.BlockSpec((B, TILE_N, N), lambda l, t: (0, t, 0)),   # adj row tile (streamed)
        pl.BlockSpec((B, N, P),      lambda l, t: (0, 0, 0)),   # padded x (resident)
        pl.BlockSpec((1, P),         lambda l, t: (0, 0)),      # hidden-lane mask
        pl.BlockSpec((1, P, P),      lambda l, t: (l, 0, 0)),   # conv W, per layer
        pl.BlockSpec((1, 1, P),      lambda l, t: (l, 0, 0)),   # conv b, per layer
        pl.BlockSpec((1, P, P),      lambda l, t: (l, 0, 0)),   # pred W slice, per layer
        pl.BlockSpec((1, P),         lambda l, t: (0, 0)),      # pred bias
    ]
    out_specs = pl.BlockSpec((B, P), lambda l, t: (0, 0))
    scratch_shapes = [
        pltpu.VMEM((2, B, N, P), jnp.bfloat16),   # h ping-pong across layers
        pltpu.VMEM((B, P), jnp.float32),          # per-layer running node-max
    ]

    # Explicit VMEM budget (review: set it per-generation instead of relying on
    # the scoped default; this stays well under v7x's 32 MiB scoped default at
    # the chosen TILE_N).
    vmem_need = (2 * (B * TILE_N * N * 2)       # double-buffered adj tile (bf16)
                 + B * N * P * 2                # resident padded x (bf16)
                 + 2 * B * N * P * 2            # h ping-pong scratch (bf16)
                 + 4 * (P * P * 2)              # conv + pred weight blocks
                 + 16 * P * 4 + 8 * B * P * 4)  # biases / mask / pooled / out
    vmem_limit = int(min(max(2 * vmem_need + (4 << 20), 16 << 20), 100 << 20))

    flops = (num_layers * (2 * B * N * N * P + 2 * B * N * P * P)
             + num_layers * 2 * B * P * P)
    transcendentals = num_layers * B * N + (num_layers - 1) * N
    bytes_accessed = (num_layers * B * N * N * 2 + B * N * P * 2
                      + 2 * num_layers * P * P * 2 + B * P * 4)

    ypred_pad = pl.pallas_call(
        kernel,
        out_shape=jax.ShapeDtypeStruct((B, P), jnp.float32),
        grid_spec=pltpu.PrefetchScalarGridSpec(
            num_scalar_prefetch=0,
            grid=(num_layers, num_tiles),
            in_specs=in_specs,
            out_specs=out_specs,
            scratch_shapes=scratch_shapes),
        compiler_params=pltpu.CompilerParams(
            dimension_semantics=("arbitrary", "arbitrary"),
            vmem_limit_bytes=vmem_limit),
        cost_estimate=pl.CostEstimate(flops=flops,
                                      transcendentals=transcendentals,
                                      bytes_accessed=bytes_accessed),
    )(adj_bf, x_pad, hmask, w_all, b_all, wp_all, bp)

    ypred = ypred_pad[:, :label_dim]
    # att=False: every layer's adj_att is adj itself; broadcast lazily instead
    # of writing num_layers redundant copies from the kernel.
    adj_att_tensor = jnp.broadcast_to(
        adj[:, :, :, None].astype(jnp.float32), (B, N, N, num_layers))
    return ypred, adj_att_tensor


# ---------------------------------------------------------------------------
# Parameter construction (deterministic, xavier_uniform with relu gain)
# ---------------------------------------------------------------------------
def xavier_uniform(key, fan_in, fan_out, gain):
    bound = gain * jnp.sqrt(6.0 / (fan_in + fan_out))
    return jax.random.uniform(key, (fan_in, fan_out), jnp.float32, -bound, bound)


def make_params(key, input_dim, hidden_dim, embedding_dim, label_dim, num_layers):
    gain = jnp.sqrt(2.0)  # nn.init.calculate_gain('relu')
    keys = jax.random.split(key, num_layers + 2)
    params = {
        "conv_first": {"w": xavier_uniform(keys[0], input_dim, hidden_dim, gain),
                       "b": jnp.zeros((hidden_dim,), jnp.float32)},
        "conv_block": [],
        "conv_last": {"w": xavier_uniform(keys[1], hidden_dim, embedding_dim, gain),
                      "b": jnp.zeros((embedding_dim,), jnp.float32)},
    }
    for i in range(num_layers - 2):
        params["conv_block"].append(
            {"w": xavier_uniform(keys[2 + i], hidden_dim, hidden_dim, gain),
             "b": jnp.zeros((hidden_dim,), jnp.float32)})
    pred_input_dim = hidden_dim * (num_layers - 1) + embedding_dim  # concat=True
    bound = 1.0 / jnp.sqrt(pred_input_dim)
    kpw, kpb = jax.random.split(keys[-1])
    params["pred"] = {
        "w": jax.random.uniform(kpw, (pred_input_dim, label_dim), jnp.float32,
                                -bound, bound),
        "b": jax.random.uniform(kpb, (label_dim,), jnp.float32, -bound, bound),
    }
    return params


# ---------------------------------------------------------------------------
# Pure-JAX f32 reference (mirrors the PyTorch forward) for a sanity check
# ---------------------------------------------------------------------------
def _ref_gconv(h, adj, w, b):
    y = jnp.einsum('bij,bjd->bid', adj, h)
    y = jnp.einsum('bnd,de->bne', y, w) + b
    n = jnp.sqrt(jnp.sum(y * y, axis=-1, keepdims=True))
    return y / jnp.maximum(n, EPS_NORM)


def _ref_bn(x):
    mean = jnp.mean(x, axis=(0, 2), keepdims=True)
    var = jnp.mean((x - mean) ** 2, axis=(0, 2), keepdims=True)
    return (x - mean) * jax.lax.rsqrt(var + EPS_BN)


def _reference_forward(params, x, adj):
    h = _ref_gconv(x, adj, params["conv_first"]["w"], params["conv_first"]["b"])
    h = _ref_bn(jax.nn.relu(h))
    out_all = [jnp.max(h, axis=1)]
    for blk in params["conv_block"]:
        h = _ref_gconv(h, adj, blk["w"], blk["b"])
        h = _ref_bn(jax.nn.relu(h))
        out_all.append(jnp.max(h, axis=1))
    h = _ref_gconv(h, adj, params["conv_last"]["w"], params["conv_last"]["b"])
    out_all.append(jnp.max(h, axis=1))
    output = jnp.concatenate(out_all, axis=1)
    return output @ params["pred"]["w"] + params["pred"]["b"]


if __name__ == "__main__":
    B, N = 2, 16
    input_dim, hidden_dim, embedding_dim, label_dim = 8, 32, 16, 4
    num_layers = 3

    key = jax.random.PRNGKey(0)
    kx, ka, kp = jax.random.split(key, 3)

    x = jax.random.normal(kx, (B, N, input_dim), jnp.float32)
    a = (jax.random.uniform(ka, (B, N, N)) > 0.5).astype(jnp.float32)
    adj = jnp.maximum(a, jnp.transpose(a, (0, 2, 1)))            # symmetric 0/1
    adj = jnp.maximum(adj, jnp.eye(N, dtype=jnp.float32)[None])  # self loops

    params = make_params(kp, input_dim, hidden_dim, embedding_dim, label_dim,
                         num_layers)

    ypred, adj_att = gcn_encoder_graph_forward(params, x, adj)
    jax.block_until_ready((ypred, adj_att))

    assert ypred.shape == (B, label_dim)
    assert adj_att.shape == (B, N, N, num_layers)
    assert bool(jnp.all(jnp.isfinite(ypred)))

    # Loose numerical check vs the pure-f32 reference (kernel uses bf16 MXU
    # inputs with f32 accumulation, so small drift is expected).
    ypred_ref = _reference_forward(params, x, adj)
    max_err = float(jnp.max(jnp.abs(ypred - ypred_ref)))
    assert max_err < 0.2, f"max abs err vs f32 reference: {max_err}"

    print("KERNEL_OK")
</pallas_src>

<mosaic_0001>
module attributes {stable_mosaic.version = 11 : i64} {
  func.func @kernel(%arg0: i32, %arg1: i32, %arg2: memref<2x16x16xbf16, #tpu.memory_space<vmem>>, %arg3: memref<2x16x128xbf16, #tpu.memory_space<vmem>>, %arg4: memref<1x128xf32, #tpu.memory_space<vmem>>, %arg5: memref<1x128x128xbf16, #tpu.memory_space<vmem>>, %arg6: memref<1x1x128xf32, #tpu.memory_space<vmem>>, %arg7: memref<1x128x128xbf16, #tpu.memory_space<vmem>>, %arg8: memref<1x128xf32, #tpu.memory_space<vmem>>, %arg9: memref<2x128xf32, #tpu.memory_space<vmem>>, %arg10: memref<2x2x16x128xbf16, #tpu.memory_space<vmem>>, %arg11: memref<2x128xf32, #tpu.memory_space<vmem>>) attributes {dimension_semantics = [#tpu.dimension_semantics<arbitrary>, #tpu.dimension_semantics<arbitrary>], iteration_bounds = array<i64: 3, 1>, scalar_prefetch = 0 : i64, scratch_operands = 2 : i64, tpu.core_type = #tpu.core_type<tc>, window_params = [{transform_indices = @transform_0, window_bounds = array<i64: 2, 16, 16>}, {pipeline_mode = #tpu.pipeline_mode<synchronous>, transform_indices = @transform_1, window_bounds = array<i64: 2, 16, 128>}, {pipeline_mode = #tpu.pipeline_mode<synchronous>, transform_indices = @transform_2, window_bounds = array<i64: 1, 128>}, {transform_indices = @transform_3, window_bounds = array<i64: 1, 128, 128>}, {transform_indices = @transform_4, window_bounds = array<i64: 1, 1, 128>}, {transform_indices = @transform_5, window_bounds = array<i64: 1, 128, 128>}, {pipeline_mode = #tpu.pipeline_mode<synchronous>, transform_indices = @transform_6, window_bounds = array<i64: 1, 128>}, {pipeline_mode = #tpu.pipeline_mode<synchronous>, transform_indices = @transform_7, window_bounds = array<i64: 2, 128>}]} {
    %c2_i32 = arith.constant 2 : i32
    %c0_i32 = arith.constant 0 : i32
    %0 = arith.cmpi eq, %c2_i32, %c0_i32 : i32
    %c1_i32 = arith.constant 1 : i32
    %1 = arith.select %0, %c1_i32, %c2_i32 : i32
    %2 = arith.remsi %arg0, %1 : i32
    %c0_i32_0 = arith.constant 0 : i32
    %3 = arith.cmpi ne, %2, %c0_i32_0 : i32
    %c0_i32_1 = arith.constant 0 : i32
    %4 = arith.cmpi slt, %2, %c0_i32_1 : i32
    %c0_i32_2 = arith.constant 0 : i32
    %5 = arith.cmpi slt, %1, %c0_i32_2 : i32
    %6 = arith.xori %4, %5 : i1
    %7 = arith.andi %6, %3 : i1
    %8 = arith.addi %2, %1 : i32
    %9 = arith.select %7, %8, %2 : i32
    %c2_i32_3 = arith.constant 2 : i32
    %10 = arith.cmpi eq, %arg0, %c2_i32_3 : i32
    %c16_i32 = arith.constant 16 : i32
    %11 = arith.muli %arg1, %c16_i32 : i32
    %12 = tpu.assume_multiple %11, 16 : i32
    %c0_i32_4 = arith.constant 0 : i32
    %13 = arith.cmpi eq, %arg0, %c0_i32_4 : i32
    %c0_i32_5 = arith.constant 0 : i32
    %14 = arith.cmpi eq, %arg1, %c0_i32_5 : i32
    %15 = arith.andi %13, %14 : i1
    %16 = arith.extui %15 : i1 to i32
    %c0_i32_6 = arith.constant 0 : i32
    %17 = arith.cmpi ne, %16, %c0_i32_6 : i32
    scf.if %17 {
      %c0_27 = arith.constant 0 : index
      %c0_28 = arith.constant 0 : index
      %c0_29 = arith.constant 0 : index
      %51 = vector.load %arg3[%c0_27, %c0_28, %c0_29] : memref<2x16x128xbf16, #tpu.memory_space<vmem>>, vector<2x16x128xbf16>
      %c0_30 = arith.constant 0 : index
      %c0_31 = arith.constant 0 : index
      %c0_32 = arith.constant 0 : index
      %c0_33 = arith.constant 0 : index
      %52 = vector.load %arg10[%c0_30, %c0_31, %c0_32, %c0_33] : memref<2x2x16x128xbf16, #tpu.memory_space<vmem>>, vector<1x2x16x128xbf16>
      %53 = vector.shape_cast %52 : vector<1x2x16x128xbf16> to vector<2x16x128xbf16>
      %54 = vector.shape_cast %51 : vector<2x16x128xbf16> to vector<1x2x16x128xbf16>
      tpu.vector_store %arg10[%c0_30, %c0_31, %c0_32, %c0_33], %54 {strides = array<i32>} : memref<2x2x16x128xbf16, #tpu.memory_space<vmem>>, vector<1x2x16x128xbf16>,
      %c0_34 = arith.constant 0 : index
      %c0_35 = arith.constant 0 : index
      %55 = vector.load %arg8[%c0_34, %c0_35] : memref<1x128xf32, #tpu.memory_space<vmem>>, vector<1x128xf32>
      %56 = vector.shape_cast %55 : vector<1x128xf32> to vector<1x128xf32>
      %57 = vector.broadcast %56 : vector<1x128xf32> to vector<2x128xf32>
      %c0_36 = arith.constant 0 : index
      %c0_37 = arith.constant 0 : index
      %58 = vector.load %arg9[%c0_36, %c0_37] : memref<2x128xf32, #tpu.memory_space<vmem>>, vector<2x128xf32>
      tpu.vector_store %arg9[%c0_36, %c0_37], %57 {strides = array<i32>} : memref<2x128xf32, #tpu.memory_space<vmem>>, vector<2x128xf32>,
    } else {
    }
    %c0_i32_7 = arith.constant 0 : i32
    %18 = arith.cmpi eq, %arg1, %c0_i32_7 : i32
    %19 = arith.extui %18 : i1 to i32
    %c0_i32_8 = arith.constant 0 : i32
    %20 = arith.cmpi ne, %19, %c0_i32_8 : i32
    scf.if %20 {
      %cst_27 = arith.constant 0xFF800000 : f32
      %51 = vector.broadcast %cst_27 : f32 to vector<2x128xf32>
      %c0_28 = arith.constant 0 : index
      %c0_29 = arith.constant 0 : index
      %52 = vector.load %arg11[%c0_28, %c0_29] : memref<2x128xf32, #tpu.memory_space<vmem>>, vector<2x128xf32>
      tpu.vector_store %arg11[%c0_28, %c0_29], %51 {strides = array<i32>} : memref<2x128xf32, #tpu.memory_space<vmem>>, vector<2x128xf32>,
    } else {
    }
    %c0 = arith.constant 0 : index
    %c0_9 = arith.constant 0 : index
    %c0_10 = arith.constant 0 : index
    %21 = vector.load %arg2[%c0, %c0_9, %c0_10] : memref<2x16x16xbf16, #tpu.memory_space<vmem>>, vector<2x16x16xbf16>
    %22 = arith.index_cast %9 : i32 to index
    %c0_11 = arith.constant 0 : index
    %c0_12 = arith.constant 0 : index
    %c0_13 = arith.constant 0 : index
    %23 = vector.load %arg10[%22, %c0_11, %c0_12, %c0_13] : memref<2x2x16x128xbf16, #tpu.memory_space<vmem>>, vector<1x2x16x128xbf16>
    %24 = vector.shape_cast %23 : vector<1x2x16x128xbf16> to vector<2x16x128xbf16>
    "tpu.trace_start"() <{level = 10 : i32, message = "bij,bjd->bid"}> : () -> ()
    %cst = arith.constant dense<0.000000e+00> : vector<2x16x128xf32>
    %25 = tpu.matmul %21, %24, %cst {dimension_numbers = #tpu.dot_dimension_numbers<[2], [1], [1], [2], [0, 0, 0, 1, 1, 2], [0], [0]>} : vector<2x16x16xbf16>, vector<2x16x128xbf16>, vector<2x16x128xf32> -> vector<2x16x128xf32>
    "tpu.trace_stop"() : () -> ()
    %c0_14 = arith.constant 0 : index
    %c0_15 = arith.constant 0 : index
    %c0_16 = arith.constant 0 : index
    %26 = vector.load %arg5[%c0_14, %c0_15, %c0_16] : memref<1x128x128xbf16, #tpu.memory_space<vmem>>, vector<1x128x128xbf16>
    %27 = vector.shape_cast %26 : vector<1x128x128xbf16> to vector<128x128xbf16>
    %28 = arith.truncf %25 : vector<2x16x128xf32> to vector<2x16x128xbf16>
    %29 = vector.shape_cast %28 : vector<2x16x128xbf16> to vector<32x128xbf16>
    %cst_17 = arith.constant dense<0.000000e+00> : vector<32x128xf32>
    %30 = tpu.matmul %29, %27, %cst_17 {dimension_numbers = #tpu.dot_dimension_numbers<[1], [0], [0], [1], [0, 0, 1, 1], [], []>} : vector<32x128xbf16>, vector<128x128xbf16>, vector<32x128xf32> -> vector<32x128xf32>
    %31 = vector.shape_cast %30 : vector<32x128xf32> to vector<2x16x128xf32>
    %c0_18 = arith.constant 0 : index
    %c0_19 = arith.constant 0 : index
    %c0_20 = arith.constant 0 : index
    %32 = vector.load %arg6[%c0_18, %c0_19, %c0_20] : memref<1x1x128xf32, #tpu.memory_space<vmem>>, vector<1x1x128xf32>
    %33 = vector.broadcast %32 : vector<1x1x128xf32> to vector<2x16x128xf32>
    %34 = arith.addf %31, %33 : vector<2x16x128xf32>
    %35 = arith.mulf %34, %34 : vector<2x16x128xf32>
    %cst_21 = arith.constant dense<0.000000e+00> : vector<2x16xf32>
    %36 = vector.multi_reduction <add>, %35, %cst_21 [2] : vector<2x16x128xf32> to vector<2x16xf32>
    %37 = vector.shape_cast %36 : vector<2x16xf32> to vector<2x16x1xf32>
    %cst_22 = arith.constant 1.000000e-24 : f32
    %38 = vector.broadcast %cst_22 : f32 to vector<2x16x1xf32>
    %39 = arith.maximumf %37, %38 : vector<2x16x1xf32>
    %40 = math.rsqrt %39 : vector<2x16x1xf32>
    %41 = vector.broadcast %40 : vector<2x16x1xf32> to vector<2x16x128xf32>
    %42 = arith.mulf %34, %41 : vector<2x16x128xf32>
    %true = arith.constant true
    %43 = arith.xori %10, %true : i1
    %44 = arith.extui %43 : i1 to i32
    %c0_i32_23 = arith.constant 0 : i32
    %45 = arith.cmpi ne, %44, %c0_i32_23 : i32
    scf.if %45 {
      %cst_27 = arith.constant 0.000000e+00 : f32
      %51 = vector.broadcast %cst_27 : f32 to vector<2x16x128xf32>
      %52 = arith.maximumf %42, %51 : vector<2x16x128xf32>
      %cst_28 = arith.constant dense<0.000000e+00> : vector<2x16xf32>
      %53 = vector.multi_reduction <add>, %52, %cst_28 [2] : vector<2x16x128xf32> to vector<2x16xf32>
      %54 = vector.shape_cast %53 : vector<2x16xf32> to vector<2x16x1xf32>
      %55 = arith.mulf %52, %52 : vector<2x16x128xf32>
      %cst_29 = arith.constant dense<0.000000e+00> : vector<2x16xf32>
      %56 = vector.multi_reduction <add>, %55, %cst_29 [2] : vector<2x16x128xf32> to vector<2x16xf32>
      %57 = vector.shape_cast %56 : vector<2x16xf32> to vector<2x16x1xf32>
      %cst_30 = arith.constant dense<0.000000e+00> : vector<16x1xf32>
      %58 = vector.multi_reduction <add>, %54, %cst_30 [0] : vector<2x16x1xf32> to vector<16x1xf32>
      %59 = vector.shape_cast %58 : vector<16x1xf32> to vector<1x16x1xf32>
      %cst_31 = arith.constant 6.400000e+01 : f32
      %60 = vector.broadcast %cst_31 : f32 to vector<1x16x1xf32>
      %61 = arith.divf %59, %60 : vector<1x16x1xf32>
      %cst_32 = arith.constant dense<0.000000e+00> : vector<16x1xf32>
      %62 = vector.multi_reduction <add>, %57, %cst_32 [0] : vector<2x16x1xf32> to vector<16x1xf32>
      %63 = vector.shape_cast %62 : vector<16x1xf32> to vector<1x16x1xf32>
      %cst_33 = arith.constant 6.400000e+01 : f32
      %64 = vector.broadcast %cst_33 : f32 to vector<1x16x1xf32>
      %65 = arith.divf %63, %64 : vector<1x16x1xf32>
      %66 = arith.mulf %61, %61 : vector<1x16x1xf32>
      %67 = arith.subf %65, %66 : vector<1x16x1xf32>
      %cst_34 = arith.constant 0.000000e+00 : f32
      %68 = vector.broadcast %cst_34 : f32 to vector<1x16x1xf32>
      %69 = arith.maximumf %67, %68 : vector<1x16x1xf32>
      %c0_35 = arith.constant 0 : index
      %c0_36 = arith.constant 0 : index
      %70 = vector.load %arg4[%c0_35, %c0_36] : memref<1x128xf32, #tpu.memory_space<vmem>>, vector<1x128xf32>
      %71 = vector.shape_cast %70 : vector<1x128xf32> to vector<1x1x128xf32>
      %cst_37 = arith.constant 9.99999974E-6 : f32
      %72 = vector.broadcast %cst_37 : f32 to vector<1x16x1xf32>
      %73 = arith.addf %69, %72 : vector<1x16x1xf32>
      %74 = math.rsqrt %73 : vector<1x16x1xf32>
      %75 = vector.broadcast %71 : vector<1x1x128xf32> to vector<1x16x128xf32>
      %76 = vector.broadcast %74 : vector<1x16x1xf32> to vector<1x16x128xf32>
      %77 = arith.mulf %75, %76 : vector<1x16x128xf32>
      %78 = vector.broadcast %61 : vector<1x16x1xf32> to vector<2x16x128xf32>
      %79 = arith.subf %52, %78 : vector<2x16x128xf32>
      %80 = vector.broadcast %77 : vector<1x16x128xf32> to vector<2x16x128xf32>
      %81 = arith.mulf %79, %80 : vector<2x16x128xf32>
      %82 = arith.truncf %81 : vector<2x16x128xf32> to vector<2x16x128xbf16>
      %c0_i32_38 = arith.constant 0 : i32
      %83 = arith.cmpi eq, %9, %c0_i32_38 : i32
      %84 = arith.extui %83 : i1 to i32
      %c0_i32_39 = arith.constant 0 : i32
      %85 = arith.cmpi ne, %84, %c0_i32_39 : i32
      scf.if %85 {
        %c1 = arith.constant 1 : index
        %c0_47 = arith.constant 0 : index
        %93 = arith.index_cast %12 : i32 to index
        %c0_48 = arith.constant 0 : index
        %94 = vector.load %arg10[%c1, %c0_47, %93, %c0_48] : memref<2x2x16x128xbf16, #tpu.memory_space<vmem>>, vector<1x2x16x128xbf16>
        %95 = vector.shape_cast %94 : vector<1x2x16x128xbf16> to vector<2x16x128xbf16>
        %96 = vector.shape_cast %82 : vector<2x16x128xbf16> to vector<1x2x16x128xbf16>
        tpu.vector_store %arg10[%c1, %c0_47, %93, %c0_48], %96 {strides = array<i32>} : memref<2x2x16x128xbf16, #tpu.memory_space<vmem>>, vector<1x2x16x128xbf16>,
      } else {
      }
      %c1_i32_40 = arith.constant 1 : i32
      %86 = arith.cmpi eq, %9, %c1_i32_40 : i32
      %87 = arith.extui %86 : i1 to i32
      %c0_i32_41 = arith.constant 0 : i32
      %88 = arith.cmpi ne, %87, %c0_i32_41 : i32
      scf.if %88 {
        %c0_47 = arith.constant 0 : index
        %c0_48 = arith.constant 0 : index
        %93 = arith.index_cast %12 : i32 to index
        %c0_49 = arith.constant 0 : index
        %94 = vector.load %arg10[%c0_47, %c0_48, %93, %c0_49] : memref<2x2x16x128xbf16, #tpu.memory_space<vmem>>, vector<1x2x16x128xbf16>
        %95 = vector.shape_cast %94 : vector<1x2x16x128xbf16> to vector<2x16x128xbf16>
        %96 = vector.shape_cast %82 : vector<2x16x128xbf16> to vector<1x2x16x128xbf16>
        tpu.vector_store %arg10[%c0_47, %c0_48, %93, %c0_49], %96 {strides = array<i32>} : memref<2x2x16x128xbf16, #tpu.memory_space<vmem>>, vector<1x2x16x128xbf16>,
      } else {
      }
      %c0_42 = arith.constant 0 : index
      %c0_43 = arith.constant 0 : index
      %89 = vector.load %arg11[%c0_42, %c0_43] : memref<2x128xf32, #tpu.memory_space<vmem>>, vector<2x128xf32>
      %cst_44 = arith.constant dense<0xFF800000> : vector<2x128xf32>
      %90 = vector.multi_reduction <maximumf>, %81, %cst_44 [1] : vector<2x16x128xf32> to vector<2x128xf32>
      %91 = arith.maximumf %89, %90 : vector<2x128xf32>
      %c0_45 = arith.constant 0 : index
      %c0_46 = arith.constant 0 : index
      %92 = vector.load %arg11[%c0_45, %c0_46] : memref<2x128xf32, #tpu.memory_space<vmem>>, vector<2x128xf32>
      tpu.vector_store %arg11[%c0_45, %c0_46], %91 {strides = array<i32>} : memref<2x128xf32, #tpu.memory_space<vmem>>, vector<2x128xf32>,
    } else {
    }
    %46 = arith.extui %10 : i1 to i32
    %c0_i32_24 = arith.constant 0 : i32
    %47 = arith.cmpi ne, %46, %c0_i32_24 : i32
    scf.if %47 {
      %c0_27 = arith.constant 0 : index
      %c0_28 = arith.constant 0 : index
      %51 = vector.load %arg11[%c0_27, %c0_28] : memref<2x128xf32, #tpu.memory_space<vmem>>, vector<2x128xf32>
      %cst_29 = arith.constant dense<0xFF800000> : vector<2x128xf32>
      %52 = vector.multi_reduction <maximumf>, %42, %cst_29 [1] : vector<2x16x128xf32> to vector<2x128xf32>
      %53 = arith.maximumf %51, %52 : vector<2x128xf32>
      %c0_30 = arith.constant 0 : index
      %c0_31 = arith.constant 0 : index
      %54 = vector.load %arg11[%c0_30, %c0_31] : memref<2x128xf32, #tpu.memory_space<vmem>>, vector<2x128xf32>
      tpu.vector_store %arg11[%c0_30, %c0_31], %53 {strides = array<i32>} : memref<2x128xf32, #tpu.memory_space<vmem>>, vector<2x128xf32>,
    } else {
    }
    %c0_i32_25 = arith.constant 0 : i32
    %48 = arith.cmpi eq, %arg1, %c0_i32_25 : i32
    %49 = arith.extui %48 : i1 to i32
    %c0_i32_26 = arith.constant 0 : i32
    %50 = arith.cmpi ne, %49, %c0_i32_26 : i32
    scf.if %50 {
      %c0_27 = arith.constant 0 : index
      %c0_28 = arith.constant 0 : index
      %51 = vector.load %arg9[%c0_27, %c0_28] : memref<2x128xf32, #tpu.memory_space<vmem>>, vector<2x128xf32>
      %c0_29 = arith.constant 0 : index
      %c0_30 = arith.constant 0 : index
      %52 = vector.load %arg11[%c0_29, %c0_30] : memref<2x128xf32, #tpu.memory_space<vmem>>, vector<2x128xf32>
      %53 = arith.truncf %52 : vector<2x128xf32> to vector<2x128xbf16>
      %c0_31 = arith.constant 0 : index
      %c0_32 = arith.constant 0 : index
      %c0_33 = arith.constant 0 : index
      %54 = vector.load %arg7[%c0_31, %c0_32, %c0_33] : memref<1x128x128xbf16, #tpu.memory_space<vmem>>, vector<1x128x128xbf16>
      %55 = vector.shape_cast %54 : vector<1x128x128xbf16> to vector<128x128xbf16>
      %cst_34 = arith.constant dense<0.000000e+00> : vector<2x128xf32>
      %56 = tpu.matmul %53, %55, %cst_34 {dimension_numbers = #tpu.dot_dimension_numbers<[1], [0], [0], [1], [0, 0, 1, 1], [], []>} : vector<2x128xbf16>, vector<128x128xbf16>, vector<2x128xf32> -> vector<2x128xf32>
      %57 = arith.addf %51, %56 : vector<2x128xf32>
      %c0_35 = arith.constant 0 : index
      %c0_36 = arith.constant 0 : index
      %58 = vector.load %arg9[%c0_35, %c0_36] : memref<2x128xf32, #tpu.memory_space<vmem>>, vector<2x128xf32>
      tpu.vector_store %arg9[%c0_35, %c0_36], %57 {strides = array<i32>} : memref<2x128xf32, #tpu.memory_space<vmem>>, vector<2x128xf32>,
    } else {
    }
    return
  }
  func.func @transform_0(%arg0: i32, %arg1: i32) -> (i32, i32, i32) {
    %c0_i32 = arith.constant 0 : i32
    %c0_i32_0 = arith.constant 0 : i32
    %c0_i32_1 = arith.constant 0 : i32
    return %c0_i32, %arg1, %c0_i32_0 : i32, i32, i32
  }
  func.func @transform_1(%arg0: i32, %arg1: i32) -> (i32, i32, i32) {
    %c0_i32 = arith.constant 0 : i32
    %c0_i32_0 = arith.constant 0 : i32
    %c0_i32_1 = arith.constant 0 : i32
    %c0_i32_2 = arith.constant 0 : i32
    return %c0_i32, %c0_i32_0, %c0_i32_1 : i32, i32, i32
  }
  func.func @transform_2(%arg0: i32, %arg1: i32) -> (i32, i32) {
    %c0_i32 = arith.constant 0 : i32
    %c0_i32_0 = arith.constant 0 : i32
    %c0_i32_1 = arith.constant 0 : i32
    return %c0_i32, %c0_i32_0 : i32, i32
  }
  func.func @transform_3(%arg0: i32, %arg1: i32) -> (i32, i32, i32) {
    %c0_i32 = arith.constant 0 : i32
    %c0_i32_0 = arith.constant 0 : i32
    %c0_i32_1 = arith.constant 0 : i32
    return %arg0, %c0_i32, %c0_i32_0 : i32, i32, i32
  }
  func.func @transform_4(%arg0: i32, %arg1: i32) -> (i32, i32, i32) {
    %c0_i32 = arith.constant 0 : i32
    %c0_i32_0 = arith.constant 0 : i32
    %c0_i32_1 = arith.constant 0 : i32
    return %arg0, %c0_i32, %c0_i32_0 : i32, i32, i32
  }
  func.func @transform_5(%arg0: i32, %arg1: i32) -> (i32, i32, i32) {
    %c0_i32 = arith.constant 0 : i32
    %c0_i32_0 = arith.constant 0 : i32
    %c0_i32_1 = arith.constant 0 : i32
    return %arg0, %c0_i32, %c0_i32_0 : i32, i32, i32
  }
  func.func @transform_6(%arg0: i32, %arg1: i32) -> (i32, i32) {
    %c0_i32 = arith.constant 0 : i32
    %c0_i32_0 = arith.constant 0 : i32
    %c0_i32_1 = arith.constant 0 : i32
    return %c0_i32, %c0_i32_0 : i32, i32
  }
  func.func @transform_7(%arg0: i32, %arg1: i32) -> (i32, i32) {
    %c0_i32 = arith.constant 0 : i32
    %c0_i32_0 = arith.constant 0 : i32
    %c0_i32_1 = arith.constant 0 : i32
    return %c0_i32, %c0_i32_0 : i32, i32
  }
}

</mosaic_0001>

<bundles_post_ra>
// kernel: tpu_custom_call.1
= control target key start
LH: loop header
LB: loop body
LE: loop exit
PB: predicated region body
PF: predicated region fallthrough
CT: control target
= control target key end

     0   :  { %s1921_s0 = inlined_call_operand.hbm [shape: bf16[2,16,16], index: 0, kind: input, shape index: {}]   ;;  %s1922_s1 = inlined_call_operand.hbm [shape: bf16[2,16,128], index: 1, kind: input, shape index: {}]   ;;  %s1923_s2 = inlined_call_operand.vmem [shape: f32[1,128], index: 2, kind: input, shape index: {}]   ;;  %s1924_s3 = inlined_call_operand.hbm [shape: bf16[3,128,128], index: 3, kind: input, shape index: {}]   ;;  %s1925_s4 = inlined_call_operand.vmem [shape: f32[3,1,128], index: 4, kind: input, shape index: {}]   ;;  %s1926_s5 = inlined_call_operand.hbm [shape: bf16[3,128,128], index: 5, kind: input, shape index: {}]   ;;  %s1927_s6 = inlined_call_operand.vmem [shape: f32[1,128], index: 6, kind: input, shape index: {}]   ;;  %s1928_s7 = inlined_call_operand.hbm [shape: f32[2,128], index: 7, kind: output, shape index: {}]  }
   0x1   :  { %1944 = sst [smem:[#allocation20_spill]] %s1921_s0 }
   0x2   :  { %1945 = sst [smem:[#allocation21_spill]] %s1924_s3 }
   0x3   :  { %12 = vsyncpa [#allocation5], 0 }
   0x4   :  { %13 = vsyncpa [#allocation8], 0 }
   0x5   :  { %14 = vsyncpa [#allocation6], 0  ;;  %s1579_s24 = smov 0   ;;  %s1581_s25 = smov 0  }
   0x6   :  { %s1583_s26 = smov 0   ;;  %s1585_s27 = smov 0  }
   0x7   :  { %s1587_s28 = smov 0   ;;  %s1589_s29 = smov 0  }
   0x8 LB: > { %1946 = sst [smem:[#allocation16_spill]] %s1515_s26  ;;  %s1608_s30 = sadd.s32 4294967295, %s1527_s29   ;;  %s1527_s29 = sphi %s1589_s29, %s20_s29   ;;  %s1523_s28 = sphi %s1587_s28, %s1979_s28   ;;  %s1519_s27 = sphi %s1585_s27, %s1978_s27   ;;  %s1515_s26 = sphi %s1583_s26, %s1974_s26   ;;  %s1511_s25 = sphi %s1581_s25, %s1977_s25   ;;  %s1507_s24 = sphi %s1579_s24, %s1976_s24  }
   0x9   : > { %1947 = sst [smem:[#allocation17_spill]] %s1527_s29  ;;  %p114_p0 = scmp.ne.s32.totalorder %s1515_s26, %s1511_s25 }
   0xa   : > { %p115_p1 = scmp.eq.s32.totalorder %s1527_s29, 0  ;;  %p120_p2 = scmp.ne.s32.totalorder %s1511_s25, %s1507_s24 }
   0xb   : > { %p1929_p3 = scmp.eq.s32.totalorder %s1608_s30, 0  ;;  %p1063_p5 = scmp.ge.s32.totalorder %s1527_s29, 1 }
   0xc   : > { %p116_p4 = por %p115_p1, %p114_p0  ;;  %p225_p7 = scmp.lt.s32.totalorder %s1527_s29, 4 }
   0xd   : > { %p1619_p6 = por %p1929_p3, %p120_p2  ;;  %s1529_s11 = smov [#allocation4]  }
   0xe   : > { %p1624_p8 = pnand %p1063_p5, %p225_p7  ;;  %s240_s12 = sshll.u32 %s1529_s11, 4  ;;  %s241_s12 = int_to_ptr.vmem [resolvable:$true] %s240_s12 }
   0xf   : > { %s1948_s9 = scalar_select %p1619_p6, 1, 0 }
  0x10   : > { %s1949_s10 = scalar_select %p1624_p8, 1, 0 }
  0x11   : > { %p1214_p9 = pneg %p1624_p8  ;;  %p1230_p10 = scmp.lt.s32.totalorder %s1527_s29, 3 }
  0x12   : > { %s32_s15 = sadd.s32 1, %s1523_s28  ;;  %s1952_s0 = sld [smem:[#allocation20_spill]] }
  0x13   : > { %p1633_p11 = pnand %p1214_p9, %p1929_p3  ;;  %p1637_p12 = pnand %p1230_p10, %p116_p4 }
  0x15   : > { %s1951_s14 = scalar_select %p1637_p12, 1, 0 }
  0x16   : > { %p1938_p0 = pneg %p1633_p11 }
  0x18   : > { %s1323_s18 = scalar_lea.hbm %s1952_s0, 256 }
  0x19   : > { %p1324_p13 = scmp.ne.s32.totalorder %s1952_s0, %s1323_s18  ;;  %p1330_p4 = scmp.lt.u32.totalorder %s1323_s18, %s1952_s0 }
  0x1b   : > { %p1326_p1 = pnand %p1938_p0, %p1324_p13 }
  0x1d   : > { %p1327_p2 = pneg %p1326_p1 }
  0x1f   : > { %p1332_p5 = pnand %p1330_p4, %p1327_p2 }
  0x21   : > { %1335 = shalt.err (!%p1332_p5)
}
  0x22   : > { %s1336_s23 = scalar_lea.vmem %s241_s12, 256  ;;  %p1344_p3 = scmp.lt.s32.totalorder %s241_s12, %s241_s12 }
  0x23   : > { %p1337_p7 = scmp.ne.s32.totalorder %s241_s12, %s1336_s23  ;;  %p1345_p6 = scmp.lt.s32.totalorder %s1336_s23, %s1336_s23 }
  0x25   : > { %p1339_p9 = pnand %p1337_p7, %p1938_p0  ;;  %p1346_p8 = por %p1345_p6, %p1344_p3 }
  0x27   : > { %p1340_p10 = pneg %p1339_p9 }
  0x29   : > { %p1347_p12 = pnand %p1346_p8, %p1340_p10 }
  0x2b   : > { %1350 = shalt.err (!%p1347_p12)
}
  0x2c   : > { %s1933_s24 = smov 64   ;;  %s1935_s11 = smov 4  }
  0x2d   : > { %1217 = dma.hbm_to_vmem [thread:$0]  (!%p1633_p11), %s1952_s0, 256, %s241_s12, [#allocation5], %s1933_s24, %s1933_s24, %s1935_s11  }
  0x2e   : > { %p34_p3 = scmp.ge.s32.totalorder %s32_s15, 3  ;;  %s273_s18 = sand.u32 1, %s1527_s29  }
  0x2f   : > { %s275_s19 = sand.u32 1, %s1515_s26   ;;  %s1937_s22 = sshll.u32 %s1523_s28, 10 }
  0x30   : > { %s1981_s15 = smov (%p34_p3, %s32_s15), 0  ;;  %s1671_s20 = sshll.u32 %s275_s19, 6 }
  0x31   : > { %1953 = sst [smem:[#allocation18_spill]] %s1981_s15  ;;  %s104_s21 = ssub.s32 %s1523_s28, %s1981_s15 }
  0x32   : > { %p105_p6 = scmp.eq.s32.totalorder %s104_s21, 0  ;;  %s1954_s3 = sld [smem:[#allocation21_spill]] }
  0x33   : > { %s277_s12 = scalar_lea.vmem [#allocation9], %s1671_s20  ;;  %s1955_s24 = sadd.s32 1, %s1515_s26 }
  0x34   : > { %s284_s17 = sshll.u32 %s277_s12, 4  ;;  %s1691_s19 = scalar_lea.sflag [#allocation5], %s273_s18  ;;  %s1689_s17 = int_to_ptr.vmem [resolvable:$true] %s284_s17 }
  0x35   : > { %s1687_s11 = scalar_select %p105_p6, %s1515_s26, %s1955_s24  }
  0x36   : > { %p1957_p12 = scmp.ne.s32.totalorder %s1951_s14, 0 }
  0x37   : > { %1956 = sst [smem:[#allocation19_spill]] %s1687_s11 }
  0x38   : > { %s1681_s16 = scalar_lea.hbm %s1954_s3, %s1937_s22  ;;  %p1942_p13 = pneg %p1957_p12 }
  0x39   : > { %s1351_s21 = scalar_lea.hbm %s1681_s16, 1024  ;;  %s1356_s22 = scalar_lea.hbm %s1954_s3, 3072 }
  0x3a   : > { %p1352_p8 = scmp.ne.s32.totalorder %s1681_s16, %s1351_s21  ;;  %p1357_p4 = scmp.lt.u32.totalorder %s1681_s16, %s1954_s3 }
  0x3b   : > { %p1358_p5 = scmp.lt.u32.totalorder %s1356_s22, %s1351_s21  ;;  %p1360_p9 = scmp.lt.u32.totalorder %s1351_s21, %s1681_s16 }
  0x3c   : > { %p1354_p1 = pnand %p1942_p13, %p1352_p8 }
  0x3d   : > { %p1359_p7 = por %p1358_p5, %p1357_p4 }
  0x3e   : > { %p1355_p2 = pneg %p1354_p1 }
  0x3f   : > { %p1361_p10 = por %p1360_p9, %p1359_p7 }
  0x41   : > { %p1362_p3 = pnand %p1361_p10, %p1355_p2 }
  0x43   : > { %1365 = shalt.err (!%p1362_p3)
}
  0x44   : > { %s1366_s24 = scalar_lea.vmem %s1689_s17, 1024  ;;  %s1532_s18 = smov [#allocation9]  }
  0x45   : > { %p1367_p6 = scmp.ne.s32.totalorder %s1689_s17, %s1366_s24  ;;  %s1371_s8 = sshll.u32 %s1532_s18, 4  ;;  %s1372_s8 = int_to_ptr.vmem [resolvable:$false] %s1371_s8 }
  0x46   : > { %s1373_s0 = scalar_lea.vmem %s1372_s8, 2048  ;;  %p1374_p0 = scmp.lt.s32.totalorder %s1689_s17, %s1372_s8 }
  0x47   : > { %p1369_p8 = pnand %p1367_p6, %p1942_p13  ;;  %p1375_p4 = scmp.lt.s32.totalorder %s1373_s0, %s1366_s24 }
  0x49   : > { %p1370_p1 = pneg %p1369_p8  ;;  %p1376_p5 = por %p1375_p4, %p1374_p0 }
  0x4b   : > { %p1377_p7 = pnand %p1376_p5, %p1370_p1 }
  0x4d   : > { %1380 = shalt.err (!%p1377_p7)
}
  0x4e   : > { %s1958_s22 = smov 4   ;;  %s1959_s21 = smov 64  }
  0x4f   : > { %1224 = dma.hbm_to_vmem [thread:$0]  (!%p1957_p12), %s1681_s16, 1024, %s1689_s17, %s1691_s19, %s1959_s21, %s1959_s21, %s1958_s22  }
  0x50   : > { %s1533_s23 = smov [#allocation7]   ;;  %s1960_s18 = sshll.u32 %s1523_s28, 10 }
  0x51   : > { %s253_s12 = sshll.u32 %s1533_s23, 4  ;;  %s1727_s0 = scalar_lea.hbm %s1926_s5, %s1960_s18  ;;  %s254_s12 = int_to_ptr.vmem [resolvable:$true] %s253_s12 }
  0x52   : > { %s1381_s11 = scalar_lea.hbm %s1922_s1, 256  ;;  %p1961_p2 = pneg %p1633_p11 }
  0x53   : > { %p1382_p0 = scmp.ne.s32.totalorder %s1922_s1, %s1381_s11  ;;  %p1388_p3 = scmp.lt.u32.totalorder %s1381_s11, %s1922_s1 }
  0x55   : > { %p1384_p9 = pnand %p1382_p0, %p1961_p2 }
  0x57   : > { %p1385_p10 = pneg %p1384_p9 }
  0x59   : > { %p1390_p6 = pnand %p1388_p3, %p1385_p10 }
  0x5b   : > { %1393 = shalt.err (!%p1390_p6)
}
  0x5c   : > { %s1394_s23 = scalar_lea.vmem %s254_s12, 256  ;;  %p1962_p1 = pmov %p1961_p2 }
  0x5d   : > { %p1395_p8 = scmp.ne.s32.totalorder %s254_s12, %s1394_s23  ;;  %p1402_p7 = scmp.lt.s32.totalorder %s254_s12, %s254_s12 }
  0x5e   : > { %p1403_p13 = scmp.lt.s32.totalorder %s1394_s23, %s1394_s23 }
  0x5f   : > { %p1397_p4 = pnand %p1395_p8, %p1962_p1 }
  0x60   : > { %p1404_p12 = por %p1403_p13, %p1402_p7 }
  0x61   : > { %p1398_p5 = pneg %p1397_p4 }
  0x63   : > { %p1405_p0 = pnand %p1404_p12, %p1398_p5 }
  0x65   : > { %1408 = shalt.err (!%p1405_p0)
}
  0x66   : > { %1220 = dma.hbm_to_vmem [thread:$0]  (!%p1633_p11), %s1922_s1, 256, %s254_s12, [#allocation8], %s1959_s21, %s1959_s21, %s1958_s22  }
  0x67   : > { %s304_s29 = scalar_lea.vmem [#allocation10], %s1671_s20  ;;  %s1409_s11 = scalar_lea.hbm %s1727_s0, 1024 }
  0x68   : > { %s311_s15 = sshll.u32 %s304_s29, 4  ;;  %p1410_p12 = scmp.ne.s32.totalorder %s1727_s0, %s1409_s11  ;;  %s1753_s15 = int_to_ptr.vmem [resolvable:$true] %s311_s15 }
  0x69   : > { %p1963_p13 = scmp.ne.s32.totalorder %s1951_s14, 0  ;;  %s1414_s8 = scalar_lea.hbm %s1926_s5, 3072 }
  0x6a   : > { %p1415_p3 = scmp.lt.u32.totalorder %s1727_s0, %s1926_s5  ;;  %p1416_p6 = scmp.lt.u32.totalorder %s1414_s8, %s1409_s11 }
  0x6b   : > { %p1964_p2 = pneg %p1963_p13  ;;  %p1418_p8 = scmp.lt.u32.totalorder %s1409_s11, %s1727_s0 }
  0x6c   : > { %p1417_p11 = por %p1416_p6, %p1415_p3 }
  0x6d   : > { %p1412_p9 = pnand %p1410_p12, %p1964_p2 }
  0x6e   : > { %p1419_p1 = por %p1418_p8, %p1417_p11 }
  0x6f   : > { %p1413_p10 = pneg %p1412_p9 }
  0x71   : > { %p1420_p4 = pnand %p1419_p1, %p1413_p10 }
  0x73   : > { %1423 = shalt.err (!%p1420_p4)
}
  0x74   : > { %s1424_s20 = scalar_lea.vmem %s1753_s15, 1024  ;;  %p1965_p7 = pmov %p1964_p2 }
  0x75   : > { %p1425_p5 = scmp.ne.s32.totalorder %s1753_s15, %s1424_s20  ;;  %s1534_s12 = smov [#allocation10]  }
  0x76   : > { %s1429_s17 = sshll.u32 %s1534_s12, 4  ;;  %s1430_s17 = int_to_ptr.vmem [resolvable:$false] %s1429_s17 }
  0x77   : > { %p1427_p0 = pnand %p1425_p5, %p1965_p7  ;;  %s1431_s23 = scalar_lea.vmem %s1430_s17, 2048 }
  0x78   : > { %p1432_p2 = scmp.lt.s32.totalorder %s1753_s15, %s1430_s17  ;;  %p1433_p9 = scmp.lt.s32.totalorder %s1431_s23, %s1424_s20 }
  0x79   : > { %p1428_p12 = pneg %p1427_p0 }
  0x7a   : > { %p1434_p3 = por %p1433_p9, %p1432_p2 }
  0x7c   : > { %p1435_p6 = pnand %p1434_p3, %p1428_p12 }
  0x7e   : > { %1438 = shalt.err (!%p1435_p6)
}
  0x7f   : > { %1227 = dma.hbm_to_vmem [thread:$0]  (!%p1963_p13), %s1727_s0, 1024, %s1753_s15, %s1691_s19, %s1959_s21, %s1959_s21, %s1958_s22  }
  0x80   : > { %p1966_p10 = scmp.ne.s32.totalorder %s1949_s10, 0 }
  0x81   : > { %p1967_p11 = scmp.eq.s32.totalorder (!%p1966_p10), %s1608_s30, 0 }
  0x82   : > { %323 = sbr.rel (%p1966_p10) target bundleno = 1247 (0x4df), region = 48 }
  0x89   : > { %1490 = dma.done.wait (%p1967_p11), [#allocation5], 256   ;;  %p1968_p8 = pmov %p1967_p11 }
  0x8b   : > { %1492 = vsyncadd (%p1968_p8), [#allocation5], 4294967040  ;;  %p1969_p1 = pmov %p1968_p8 }
  0x8d   : > { %1494 = dma.done.wait (%p1969_p1), [#allocation8], 256   ;;  %p1970_p4 = pmov %p1969_p1 }
  0x8e   : > { %s333_s14 = sand.u32 1, %s1608_s30   ;;  %s335_s19 = sand.u32 1, %s1511_s25  }
  0x8f   : > { %1496 = vsyncadd (%p1970_p4), [#allocation8], 4294967040  ;;  %s1076_s22 = sshll.u32 %s335_s19, 6  ;;  %s334_s10 = scalar_lea.sflag [#allocation5], %s333_s14 }
  0x90   : > { %s1794_s21 = scalar_lea.vmem [#allocation9], %s1076_s22  ;;  %p1971_p13 = scmp.ne.s32.totalorder %s1948_s9, 0 }
  0x92   : > { %1498 = dma.done.wait (%p1971_p13), %s334_s10, 2048  }
  0x93   : > { %1500 = vsyncadd (%p1971_p13), %s334_s10, 4294965248  ;;  %p381_p5 = scmp.lt.s32.totalorder %s1519_s27, 2  ;;  %p385_p7 = scmp.lt.s32.totalorder %s1519_s27, 0 }
  0x94   : > { %s386_s0 = ssub.s32 0, %s1519_s27  ;;  %p399_p0 = scmp.eq.s32.totalorder %s1519_s27, 0 }
  0x95   : > { %s1804_s3 = scalar_select %p381_p5, %s1519_s27, 2 }
  0x96   : > { %s1078_s26 = smin.u32 %s1519_s27, %s386_s0  ;;  %s1814_s8 = scalar_lea.vmem [#allocation10], %s1076_s22  ;;  %v1291_v0 = vld [vmem:[#allocation7] sm:$0xff] (%p399_p0)   ;;  %v1292_v1 = vld [vmem:[#allocation7 + $0x8] sm:$0xff] (%p399_p0)  }
  0x97   : > { %s383_s11 = scalar_lea.vmem %s1925_s4, %s1804_s3  ;;  %s388_s9 = sand.u32 1, %s1078_s26   ;;  %421 = vst [vmem:[#allocation2] sm:$0xff] (%p399_p0), %v1291_v0  ;;  %v1084_v2 = vld [vmem:[%s1927_s6] ss:$0 sm:$0xff] (%p399_p0)  ;;  %422 = vst [vmem:[#allocation2 + $0x8] sm:$0xff] (%p399_p0), %v1292_v1 }
  0x98   : > { %s389_s13 = ssub.s32 0, %s388_s9  ;;  %404 = sbr.rel (!%p399_p0) target bundleno = 159 (0x9f), region = 68  ;;  %430 = vst [vmem:[#allocation11] sm:$0x3] (%p399_p0), %v1084_v2 }
  0x99   : > { %s1983_s13 = smov (!%p385_p7, %s389_s13), %s388_s9 }
  0x9a   : > { %p1080_p12 = scmp.lt.s32.totalorder %s1983_s13, 0  ;;  %s395_s18 = sadd.s32 2, %s1983_s13 }
  0x9c   : > { %s1985_s18 = smov (!%p1080_p12, %s395_s18), %s1983_s13 }
  0x9f PF: > { %s1122_s20 = sshll.u32 %s1985_s18, 4  ;;  %v1535_v3 = vmov -inf   ;;  %v1536_v4 = vmov 0.0   ;;  %v1293_v5 = vld [vmem:[#allocation4] sm:$0xff]   ;;  %v1294_v6 = vld [vmem:[#allocation4 + $0x8] sm:$0xff]   ;;  %vm1537_vm0 = vmmov 0  }
  0xa0   : > { %434 = vst [vmem:[#allocation3] sm:$0x3] %v1535_v3  ;;  %1146 = vmatprep.subr.bf16.mxu0 %v1536_v4  ;;  %1152 = vmatprep.subr.bf16.mxu1 %v1536_v4  ;;  %s441_s12 = scalar_lea.vmem [#allocation2], %s1122_s20  ;;  %vm449_vm1 = vcmask 130048   ;;  %v1295_v9 = vld [vmem:[%s1794_s21] sm:$0xff]   ;;  %v1296_v10 = vld [vmem:[%s1794_s21 + $0x8] sm:$0xff]  }
  0xa1   : > { %v442_v7 = vld [vmem:[%s441_s12] sm:$0xff]  ;;  %v443_v8 = vld [vmem:[%s441_s12 + $0x8] sm:$0xff]  ;;  %1148 = vmatprep.mubr.msk.bf16.mxu0 %vm1537_vm0, %v1536_v4  ;;  %1154 = vmatprep.mubr.msk.bf16.mxu1 %vm1537_vm0, %v1536_v4  ;;  %v1297_v11 = vld [vmem:[%s1794_s21 + $0x10] sm:$0xff]   ;;  %p1100_p2 = scmp.eq.s32.totalorder %s1519_s27, 2 }
  0xa2   : > { %1147 = vmatpush3.bf16.msra.mxu0 %v442_v7  ;;  %1153 = vmatpush3.bf16.msra.mxu1 %v443_v8  ;;  %v1298_v12 = vld [vmem:[%s1794_s21 + $0x18] sm:$0xff]   ;;  %v1299_v13 = vld [vmem:[%s1794_s21 + $0x20] sm:$0xff]   ;;  %v1300_v14 = vld [vmem:[%s1794_s21 + $0x28] sm:$0xff]   ;;  %p1102_p9 = scmp.ne.s32.totalorder (!%p1100_p2), %s1985_s18, 0 }
  0xa3   : > { %1158 = vmatprep.subr.bf16.mxu0 %v1295_v9  ;;  %v1301_v15 = vld [vmem:[%s1794_s21 + $0x30] sm:$0xff]   ;;  %v1302_v16 = vld [vmem:[%s1794_s21 + $0x38] sm:$0xff]  }
  0xa4   : > { %v1099_v27 = vld [vmem:[%s383_s11] ss:$0 sm:$0xff] }
  0xa5   : > { %1149 = vmatmul.mubr.msk.bf16.vlgmr.msra.gmra.mrb[0].mxu0 %vm449_vm1, %v1293_v5  ;;  %1155 = vmatmul.mubr.msk.bf16.vlgmr.msra.gmra.mrb[0].mxu1 %vm449_vm1, %v1294_v6 }
  0xa6   : > { %1159 = vmatpush3.bf16.msra.mxu0 %v1295_v9 }
  0xa7   : > { %1160 = vmatprep.subr.bf16.mxu0 %v1296_v10 }
  0xaa   : > { %1161 = vmatpush3.bf16.msra.mxu0 %v1296_v10 }
  0xab   : > { %1162 = vmatprep.subr.bf16.mxu0 %v1297_v11 }
  0xae   : > { %1163 = vmatpush3.bf16.msra.mxu0 %v1297_v11 }
  0xaf   : > { %1164 = vmatprep.subr.bf16.mxu0 %v1298_v12 }
  0xb2   : > { %1165 = vmatpush3.bf16.msra.mxu0 %v1298_v12 }
  0xb3   : > { %1166 = vmatprep.subr.bf16.mxu0 %v1299_v13 }
  0xb6   : > { %1167 = vmatpush3.bf16.msra.mxu0 %v1299_v13 }
  0xb7   : > { %1168 = vmatprep.subr.bf16.mxu0 %v1300_v14 }
  0xba   : > { %1169 = vmatpush3.bf16.msra.mxu0 %v1300_v14 }
  0xbb   : > { %1170 = vmatprep.subr.bf16.mxu0 %v1301_v15 }
  0xbe   : > { %1171 = vmatpush3.bf16.msra.mxu0 %v1301_v15 }
  0xbf   : > { %1172 = vmatprep.subr.bf16.mxu0 %v1302_v16 }
  0xc2   : > { %1173 = vmatpush3.bf16.msra.mxu0 %v1302_v16 }
 0x178   : > { %v487_v17 = vpop.f32.mrb[0].mxu0  ;;  %v536_v18 = vpop.f32.mrb[0].mxu1 }
 0x179   : > { %v1150_v19 = vpop.f32.mrb[1].mxu0  ;;  %v1156_v20 = vpop.f32.mrb[1].mxu1 }
 0x17a   : > { %v490_v21 = vpop.f32.mrb[2].mxu0  ;;  %v539_v22 = vpop.f32.mrb[2].mxu1 }
 0x17b   : > { %v559_v23 = vpack.c.bf16 %v490_v21, %v487_v17  ;;  %v560_v24 = vpack.c.bf16 %v539_v22, %v536_v18  ;;  %v1151_v25 = vpop.f32.mrb[3].mxu0  ;;  %v1157_v26 = vpop.f32.mrb[3].mxu1 }
 0x17c   : > { %v1101_v25 = vld [vmem:[%s1923_s2] ss:$0 sm:$0xff] (!%p1100_p2) }
 0x17d   : > { %1174 = vmatprep.mubr.bf16.mxu0 %v559_v23 }
 0x17e   : > { %1175 = vmatmul.mubr.bf16.vlgmr.msra.gmra.mrb[4].mxu0 %v560_v24 }
 0x251   : > { %v1176_v28 = vpop.f32.mrb[4].mxu0 }
 0x252   : > { %v667_v29 = vadd.f32 %v1176_v28, %v1099_v27  ;;  %v643_v30 = vpop.f32.mrb[5].mxu0 }
 0x253   : > { %v665_v31 = vadd.f32 %v1099_v27, %v643_v30  ;;  %v1177_v32 = vpop.f32.mrb[6].mxu0 }
 0x254   : > { %v668_v33 = vadd.f32 %v1177_v32, %v1099_v27  ;;  %v646_v34 = vpop.f32.mrb[7].mxu0  ;;  %v671_v35 = vmul.f32 %v667_v29, %v667_v29 }
 0x255   : > { %v666_v36 = vadd.f32 %v1099_v27, %v646_v34  ;;  %v669_v37 = vmul.f32 %v665_v31, %v665_v31 }
 0x256   : > { %677 = vadd.xlane.f32.xlu1 %v671_v35  ;;  %v672_v38 = vmul.f32 %v668_v33, %v668_v33 }
 0x257   : > { %673 = vadd.xlane.f32.xlu0 %v669_v37  ;;  %v670_v39 = vmul.f32 %v666_v36, %v666_v36 }
 0x25a   : > { %679 = vadd.xlane.f32.xlu1 %v672_v38 }
 0x25b   : > { %675 = vadd.xlane.f32.xlu0 %v670_v39 }
 0x2e3   : > { %v678_v40 = vpop.xlane.xlu1 %677 }
 0x2e4   : > { %v683_v41 = vmax.f32 %v678_v40, 1e-24  ;;  %v674_v42 = vpop.xlane.xlu0 %673 }
 0x2e5   : > { %v681_v43 = vmax.f32 %v674_v42, 1e-24 }
 0x2e6   : > { %1303 = vrsqrt.f32 %v683_v41 }
 0x2e7   : > { %1305 = vrsqrt.f32 %v681_v43  ;;  %v680_v44 = vpop.xlane.xlu1 %679 }
 0x2e8   : > { %v684_v45 = vmax.f32 %v680_v44, 1e-24  ;;  %v676_v46 = vpop.xlane.xlu0 %675 }
 0x2e9   : > { %v682_v47 = vmax.f32 %v676_v46, 1e-24 }
 0x2ea   : > { %1307 = vrsqrt.f32 %v684_v45 }
 0x2eb   : > { %1309 = vrsqrt.f32 %v682_v47 }
 0x2f0   : > { %v1304_v48 = vpop.eup %1303  ;;  %696 = sbr.rel (%p1100_p2) target bundleno = 967 (0x3c7), region = 76 }
 0x2f1   : > { %v1306_v49 = vpop.eup %1305  ;;  %v1839_v50 = vmul.f32 %v1304_v48, %v667_v29 }
 0x2f2   : > { %v1841_v51 = vmul.f32 %v1306_v49, %v665_v31 }
 0x2f3   : > { %v699_v56 = vmax.f32 (!%p1100_p2), %v1839_v50, 0.0 }
 0x2f4   : > { %v1308_v52 = vpop.eup %1307  ;;  %v697_v57 = vmax.f32 (!%p1100_p2), %v1841_v51, 0.0 }
 0x2f5   : > { %v1310_v53 = vpop.eup %1309  ;;  %v1843_v54 = vmul.f32 %v1308_v52, %v668_v33  ;;  %705 = vadd.xlane.f32.xlu1 (!%p1100_p2), %v699_v56  ;;  %v711_v63 = vmul.f32 (!%p1100_p2), %v699_v56, %v699_v56 }
 0x2f6   : > { %v1845_v55 = vmul.f32 %v1310_v53, %v666_v36  ;;  %701 = vadd.xlane.f32.xlu0 (!%p1100_p2), %v697_v57  ;;  %v709_v61 = vmul.f32 (!%p1100_p2), %v697_v57, %v697_v57 }
 0x2f7   : > { %v700_v58 = vmax.f32 %v1843_v54, 0.0 }
 0x2f8   : > { %v698_v59 = vmax.f32 %v1845_v55, 0.0 }
 0x2f9   : > { %707 = vadd.xlane.f32.xlu1 %v700_v58  ;;  %v712_v62 = vmul.f32 %v700_v58, %v700_v58 }
 0x2fa   : > { %703 = vadd.xlane.f32.xlu0 %v698_v59  ;;  %v710_v60 = vmul.f32 %v698_v59, %v698_v59 }
 0x2fd   : > { %715 = vadd.xlane.f32.xlu1 %v710_v60 }
 0x2fe   : > { %713 = vadd.xlane.f32.xlu0 %v709_v61 }
 0x301   : > { %719 = vadd.xlane.f32.xlu1 %v712_v62 }
 0x302   : > { %717 = vadd.xlane.f32.xlu0 %v711_v63 }
 0x382   : > { %v706_v0 = vpop.xlane.xlu1 %705 }
 0x383   : > { %v702_v1 = vpop.xlane.xlu0 %701 }
 0x384   : > { %v721_v5 = vadd.f32 %v706_v0, %v702_v1 }
 0x386   : > { %v708_v2 = vpop.xlane.xlu1 %707  ;;  %v724_v9 = vmul.f32 0.015625, %v721_v5 }
 0x387   : > { %v704_v3 = vpop.xlane.xlu0 %703 }
 0x388   : > { %v722_v6 = vadd.f32 %v708_v2, %v704_v3  ;;  %v730_v17 = vmul.f32 %v724_v9, %v724_v9  ;;  %v749_v31 = vsub.f32 %v697_v57, %v724_v9  ;;  %v751_v32 = vsub.f32 %v699_v56, %v724_v9 }
 0x38a   : > { %v716_v7 = vpop.xlane.xlu1 %715  ;;  %v725_v10 = vmul.f32 0.015625, %v722_v6 }
 0x38b   : > { %v714_v8 = vpop.xlane.xlu0 %713 }
 0x38c   : > { %v731_v16 = vmul.f32 %v725_v10, %v725_v10  ;;  %v750_v28 = vsub.f32 %v698_v59, %v725_v10  ;;  %v752_v29 = vsub.f32 %v700_v58, %v725_v10 }
 0x38e   : > { %v720_v11 = vpop.xlane.xlu1 %719 }
 0x38f   : > { %v718_v12 = vpop.xlane.xlu0 %717  ;;  %v727_v13 = vadd.f32 %v720_v11, %v716_v7 }
 0x390   : > { %v726_v14 = vadd.f32 %v718_v12, %v714_v8 }
 0x391   : > { %v729_v15 = vmul.f32 0.015625, %v727_v13 }
 0x392   : > { %v728_v18 = vmul.f32 0.015625, %v726_v14 }
 0x393   : > { %v733_v19 = vsub.f32 %v729_v15, %v731_v16 }
 0x394   : > { %v732_v20 = vsub.f32 %v728_v18, %v730_v17 }
 0x395   : > { %v735_v21 = vmax.f32 %v733_v19, 0.0 }
 0x396   : > { %v734_v22 = vmax.f32 %v732_v20, 0.0 }
 0x397   : > { %v738_v23 = vadd.f32 1e-05, %v735_v21 }
 0x398   : > { %v737_v24 = vadd.f32 1e-05, %v734_v22 }
 0x399   : > { %1311 = vrsqrt.f32 %v738_v23 }
 0x39a   : > { %1313 = vrsqrt.f32 %v737_v24 }
 0x3a3   : > { %v1312_v26 = vpop.eup %1311  ;;  %762 = sbr.rel (%p1102_p9) target bundleno = 940 (0x3ac), region = 80 }
 0x3a4   : > { %v1314_v27 = vpop.eup %1313  ;;  %v748_v30 = vmul.f32 %v1312_v26, %v1101_v25 }
 0x3a5   : > { %v747_v33 = vmul.f32 %v1314_v27, %v1101_v25 }
 0x3a6   : > { %v754_v34 = vmul.f32 %v750_v28, %v748_v30  ;;  %v756_v35 = vmul.f32 %v752_v29, %v748_v30 }
 0x3a7   : > { %v753_v36 = vmul.f32 %v749_v31, %v747_v33  ;;  %v755_v37 = vmul.f32 %v751_v32, %v747_v33 }
 0x3a9   : > { %v757_v38 = vpack.c.bf16 %v754_v34, %v753_v36  ;;  %v758_v39 = vpack.c.bf16 %v756_v35, %v755_v37 }
 0x3ab   : > { %1103 = vst [vmem:[#allocation2 + $0x10] sm:$0xff] %v757_v38  ;;  %1104 = vst [vmem:[#allocation2 + $0x18] sm:$0xff] %v758_v39 }
 0x3ac PF: > { %p1105_p3 = scmp.ne.s32.totalorder %s1985_s18, 1 }
 0x3ad   : > { %778 = vst [vmem:[#allocation2] sm:$0xff] (!%p1105_p3), %v757_v38  ;;  %779 = vst [vmem:[#allocation2 + $0x8] sm:$0xff] (!%p1105_p3), %v758_v39 }
 0x3ae   : > { %773 = sbr.rel (%p1105_p3) target bundleno = 949 (0x3b5), region = 84 }
 0x3b5 PF: > { %v781_v40 = vmax.f32 %v753_v36, %v754_v34  ;;  %v788_v41 = vmax.f32 %v755_v37, %v756_v35  ;;  %vm797_vm2 = vcmask 1041409   ;;  %v780_v56 = vld [vmem:[#allocation3] sm:$0x3] }
 0x3b7   : > { %v782_v42 = vrot.slane %v781_v40, 4  ;;  %v789_v43 = vrot.slane %v788_v41, 4 }
 0x3b9   : > { %v783_v44 = vmax.f32 %v781_v40, %v782_v42  ;;  %v790_v45 = vmax.f32 %v788_v41, %v789_v43 }
 0x3bb   : > { %v784_v46 = vrot.slane %v783_v44, 2  ;;  %v791_v47 = vrot.slane %v790_v45, 2 }
 0x3bd   : > { %v785_v48 = vmax.f32 %v783_v44, %v784_v46  ;;  %v792_v49 = vmax.f32 %v790_v45, %v791_v47 }
 0x3bf   : > { %v786_v52 = vrot.slane %v785_v48, 1  ;;  %v793_v53 = vrot.slane %v792_v49, 1 }
 0x3c1   : > { %v787_v57 = vmax.f32 %v785_v48, %v786_v52  ;;  %v794_v58 = vmax.f32 %v792_v49, %v793_v53 }
 0x3c3   : > { %v798_v59 = vsel %vm797_vm2, %v794_v58, %v787_v57 }
 0x3c4   : > { %v800_v60 = vmax.f32 %v780_v56, %v798_v59 }
 0x3c6   : > { %801 = vst [vmem:[#allocation3] sm:$0x3] %v800_v60 }
 0x3c7 PF: > { %p1106_p6 = scmp.ne.s32.totalorder %s1519_s27, 2 }
 0x3c8   : > { %v806_v61 = vmax.f32 (!%p1106_p6), %v1841_v51, %v1845_v55  ;;  %v813_v62 = vmax.f32 (!%p1106_p6), %v1839_v50, %v1843_v54  ;;  %vm822_vm3 = vcmask (!%p1106_p6), 1041409  }
 0x3c9   : > { %804 = sbr.rel (%p1106_p6) target bundleno = 986 (0x3da), region = 88 }
 0x3ca   : > { %v807_v63 = vrot.slane (!%p1106_p6), %v806_v61, 4  ;;  %v814_v0 = vrot.slane (!%p1106_p6), %v813_v62, 4 }
 0x3cc   : > { %v808_v1 = vmax.f32 (!%p1106_p6), %v806_v61, %v807_v63  ;;  %v815_v2 = vmax.f32 (!%p1106_p6), %v813_v62, %v814_v0 }
 0x3cd   : > { %v805_v10 = vld [vmem:[#allocation3] sm:$0x3] (!%p1106_p6) }
 0x3ce   : > { %v809_v3 = vrot.slane (!%p1106_p6), %v808_v1, 2  ;;  %v816_v5 = vrot.slane (!%p1106_p6), %v815_v2, 2 }
 0x3d0   : > { %v810_v6 = vmax.f32 %v808_v1, %v809_v3  ;;  %v817_v7 = vmax.f32 %v815_v2, %v816_v5 }
 0x3d2   : > { %v811_v8 = vrot.slane %v810_v6, 1  ;;  %v818_v9 = vrot.slane %v817_v7, 1 }
 0x3d4   : > { %v812_v11 = vmax.f32 %v810_v6, %v811_v8  ;;  %v819_v12 = vmax.f32 %v817_v7, %v818_v9 }
 0x3d6   : > { %v823_v13 = vsel %vm822_vm3, %v819_v12, %v812_v11 }
 0x3d7   : > { %v825_v14 = vmax.f32 %v805_v10, %v823_v13 }
 0x3d9   : > { %826 = vst [vmem:[#allocation3] sm:$0x3] %v825_v14 }
 0x3da PF: > { %1178 = vmatprep.subr.bf16.mxu1 %v1536_v4  ;;  %v1315_v50 = vld [vmem:[%s1814_s8] sm:$0xff]   ;;  %1194 = vmatprep.mubr.msk.bf16.mxu1 %vm1537_vm0, %v1536_v4  ;;  %v1316_v51 = vld [vmem:[%s1814_s8 + $0x8] sm:$0xff]   ;;  %v1317_v54 = vld [vmem:[%s1814_s8 + $0x10] sm:$0xff]   ;;  %s1538_s27 = smov [#allocation11]   ;;  %p1233_p10 = scmp.eq.s32.totalorder %s1608_s30, 2 }
 0x3db   : > { %1179 = vmatpush3.bf16.msra.mxu1 %v1315_v50  ;;  %v1318_v55 = vld [vmem:[%s1814_s8 + $0x18] sm:$0xff]   ;;  %v1319_v15 = vld [vmem:[%s1814_s8 + $0x20] sm:$0xff]   ;;  %v1320_v16 = vld [vmem:[%s1814_s8 + $0x28] sm:$0xff]   ;;  %s946_s22 = sshll.u32 %s1538_s27, 4  ;;  %s947_s22 = int_to_ptr.vmem [resolvable:$true] %s946_s22 }
 0x3dc   : > { %1180 = vmatprep.subr.bf16.mxu1 %v1536_v4  ;;  %v1321_v17 = vld [vmem:[%s1814_s8 + $0x30] sm:$0xff]   ;;  %v1322_v18 = vld [vmem:[%s1814_s8 + $0x38] sm:$0xff]   ;;  %v830_v21 = vld [vmem:[#allocation11] sm:$0x3]  ;;  %s1439_s10 = scalar_lea.vmem %s947_s22, 32  ;;  %p1446_p4 = scmp.lt.s32.totalorder %s947_s22, %s947_s22 }
 0x3dd   : > { %p1440_p11 = scmp.ne.s32.totalorder %s947_s22, %s1439_s10  ;;  %p1447_p13 = scmp.lt.s32.totalorder %s1439_s10, %s1439_s10 }
 0x3df   : > { %1181 = vmatpush3.bf16.msra.mxu1 %v1316_v51  ;;  %p1441_p8 = pnand %p1440_p11, %p1233_p10  ;;  %p1448_p5 = por %p1447_p13, %p1446_p4 }
 0x3e0   : > { %1182 = vmatprep.subr.bf16.mxu1 %v1536_v4  ;;  %v831_v19 = vld [vmem:[#allocation3] sm:$0x3] }
 0x3e1   : > { %v832_v20 = vpack.c.bf16 %v831_v19, %v831_v19  ;;  %p1442_p1 = pneg %p1441_p8 }
 0x3e3   : > { %1183 = vmatpush3.bf16.msra.mxu1 %v1317_v54  ;;  %p1449_p7 = pnand %p1448_p5, %p1442_p1 }
 0x3e4   : > { %1184 = vmatprep.subr.bf16.mxu1 %v1536_v4 }
 0x3e7   : > { %1185 = vmatpush3.bf16.msra.mxu1 %v1318_v55 }
 0x3e8   : > { %1186 = vmatprep.subr.bf16.mxu1 %v1536_v4 }
 0x3eb   : > { %1187 = vmatpush3.bf16.msra.mxu1 %v1319_v15 }
 0x3ec   : > { %1188 = vmatprep.subr.bf16.mxu1 %v1536_v4 }
 0x3ef   : > { %1189 = vmatpush3.bf16.msra.mxu1 %v1320_v16 }
 0x3f0   : > { %1190 = vmatprep.subr.bf16.mxu1 %v1536_v4 }
 0x3f3   : > { %1191 = vmatpush3.bf16.msra.mxu1 %v1321_v17 }
 0x3f4   : > { %1192 = vmatprep.subr.bf16.mxu1 %v1536_v4 }
 0x3f7   : > { %1193 = vmatpush3.bf16.msra.mxu1 %v1322_v18 }
 0x3fa   : > { %1195 = vmatmul.mubr.bf16.vlgmr.msra.gmra.mrb[4].mxu1 %v832_v20 }
 0x4cd   : > { %v931_v22 = vpop.f32.mrb[4].mxu1 }
 0x4ce   : > { %v937_v23 = vadd.f32 %v931_v22, %v830_v21  ;;  %v1196_v24 = vpop.f32.mrb[5].mxu1 }
 0x4cf   : > { %v934_v25 = vpop.f32.mrb[6].mxu1 }
 0x4d0   : > { %938 = vst [vmem:[#allocation11] sm:$0x3] %v937_v23  ;;  %v1197_v26 = vpop.f32.mrb[7].mxu1 }
 0x4d1   : > { %1452 = shalt.err (!%p1449_p7)
}
 0x4d2   : > { %s1453_s3 = scalar_lea.hbm %s1928_s7, 32 }
 0x4d3   : > { %p1454_p0 = scmp.ne.s32.totalorder %s1928_s7, %s1453_s3  ;;  %p1459_p9 = scmp.lt.u32.totalorder %s1453_s3, %s1928_s7 }
 0x4d5   : > { %p1455_p12 = pnand %p1454_p0, %p1233_p10 }
 0x4d7   : > { %p1456_p2 = pneg %p1455_p12 }
 0x4d9   : > { %p1461_p3 = pnand %p1459_p9, %p1456_p2 }
 0x4db   : > { %1464 = shalt.err (!%p1461_p3)
}
 0x4dc   : > { %1211 = dma.vmem_to_hbm [thread:$0]  (%p1233_p10), %s947_s22, 32, %s1928_s7, [#allocation6]  }
 0x4dd   : > { %1502 = dma.done.wait (%p1233_p10), [#allocation6], 32  }
 0x4de   : > { %1504 = vsyncadd (%p1233_p10), [#allocation6], 4294967264 }
 0x4df PF: > { %s1972_s18 = sld [smem:[#allocation17_spill]]  ;;  %s1973_s8 = sld [smem:[#allocation16_spill]] }
 0x4e0   : > { %s1974_s26 = sld [smem:[#allocation19_spill]]  ;;  %s1975_s16 = sld [smem:[#allocation18_spill]] }
 0x4e1   : > { %s1976_s24 = smov %s1511_s25  ;;  %s1978_s27 = smov %s1523_s28 }
 0x4e5   : > { %s20_s29 = sadd.s32 1, %s1972_s18   ;;  %s1977_s25 = smov %s1973_s8 }
 0x4e6   : > { %p17_p6 = scmp.ge.s32.totalorder %s20_s29, 5   ;;  %s1979_s28 = smov %s1975_s16 }
 0x4e8   :  { %19 = sbr.rel (!%p17_p6) target bundleno = 8 (0x8), region = 138 }
 0x4ef   :  { %959 = vsyncpa [#allocation5], 1 }
 0x4f0   :  { %961 = vsyncpa [#allocation5 + $0x1], 1 }
 0x4f1   :  { %962 = vsyncpa [#allocation8], 1 }
 0x4f2   :  { %963 = vsyncpa [#allocation6], 1 }
 0x4f3   :  { %965 = vsyncpa [#allocation6 + $0x1], 1 }

</bundles_post_ra>
